<compile_context>
chip_gen: v5e
topology: v5e:2x2
jax: 0.10.0
libtpu: 0.0.40
codegen_flags: <defaults>
</compile_context>

<pallas_src>
import jax
import jax.numpy as jnp
from jax.experimental import pallas as pl
from jax.experimental.pallas import tpu as pltpu


def _round_up(x, m):
    return ((x + m - 1) // m) * m


def mlp_kernel(x_ref, w1_ref, b1_ref, w2_ref, b2_ref, o_ref):
    # fc1 + ReLU (f32 accumulation on the MXU)
    h = jnp.dot(x_ref[...], w1_ref[...], preferred_element_type=jnp.float32)
    h = jnp.maximum(h + b1_ref[...], 0.0)          # (TB, H) + (1, H) broadcast
    # fc2 + ReLU
    y = jnp.dot(h, w2_ref[...], preferred_element_type=jnp.float32)
    o_ref[...] = jnp.maximum(y + b2_ref[...], 0.0).astype(o_ref.dtype)


def _resident_spec(shape):
    """Constant-index (weight/bias) block: resident in VMEM, single-buffered."""
    index_map = lambda i: (0,) * len(shape)
    try:
        return pl.BlockSpec(shape, index_map, pipeline_mode=pl.Buffered(1))
    except TypeError:
        # Older BlockSpec without pipeline_mode: weights get double-buffered
        # (harmless at these sizes, just a little extra VMEM).
        return pl.BlockSpec(shape, index_map)


def _block_diag(w, pack):
    """pack copies of w on the diagonal of a (pack*in, pack*out) matrix."""
    d_in, d_out = w.shape
    wbd = jnp.zeros((pack * d_in, pack * d_out), w.dtype)
    for q in range(pack):
        wbd = wbd.at[q * d_in:(q + 1) * d_in, q * d_out:(q + 1) * d_out].set(w)
    return wbd


def network1_forward(x, w1, b1, w2, b2, *, max_batch_tile=2048):
    """x: (B, D_in) f32; w1: (D_in, H); b1: (H,); w2: (H, H); b2: (H,)."""
    B, D_in = x.shape
    H = w1.shape[1]

    # ---- lane-dense packing ---------------------------------------------
    # If H divides 128 and B divides evenly into groups of p = 128/H rows, pack
    # p batch rows per kernel row so the output last dim is exactly 128 lanes.
    pack = 1
    if H < 128 and 128 % H == 0:
        p = 128 // H
        if B % p == 0:
            pack = p

    if pack > 1:
        rows = B // pack
        d_eff = D_in * pack
        h_eff = H * pack                     # == 128
        x_k = x.reshape(rows, d_eff)         # free row-major reshape
        w1_k = _block_diag(w1, pack)         # (p*D_in, 128), resident
        w2_k = _block_diag(w2, pack)         # (128, 128), resident
        b1_k = jnp.tile(b1, pack).reshape(1, h_eff)
        b2_k = jnp.tile(b2, pack).reshape(1, h_eff)
    else:
        rows, d_eff, h_eff = B, D_in, H
        x_k = x
        w1_k, w2_k = w1, w2
        b1_k = b1.reshape(1, H)
        b2_k = b2.reshape(1, H)

    # ---- batch tile / grid ------------------------------------------------
    # One big tile; no padding of the batch (ragged last block is masked by
    # Pallas).  Tile is capped so the double-buffered x/out slabs stay well
    # inside the default scoped VMEM limit on every generation.
    slab_bytes_per_row = 4 * (d_eff + h_eff)
    vmem_budget = 12 * 1024 * 1024
    tile_cap = max(8, (vmem_budget // (2 * slab_bytes_per_row)) // 8 * 8)
    batch_tile = min(max_batch_tile, tile_cap, _round_up(rows, 8))
    grid = (pl.cdiv(rows, batch_tile),)

    # ---- cost / VMEM hints --------------------------------------------------
    flops = 2 * rows * (d_eff * h_eff + h_eff * h_eff) + 4 * rows * h_eff
    weight_bytes = 4 * (d_eff * h_eff + h_eff * h_eff + 2 * h_eff)
    bytes_accessed = 4 * rows * (d_eff + h_eff) + weight_bytes
    cost = pl.CostEstimate(flops=flops, transcendentals=0,
                           bytes_accessed=bytes_accessed)

    # Double-buffered x/out slabs + single-buffered resident weights.
    vmem_est = 2 * batch_tile * slab_bytes_per_row + weight_bytes
    vmem_limit = None
    if vmem_est > 14 * 1024 * 1024:          # v5e default scoped limit is 16 MiB
        vmem_limit = min(int(vmem_est * 3 // 2), 48 * 1024 * 1024)  # < v7x 64 MiB

    out = pl.pallas_call(
        mlp_kernel,
        out_shape=jax.ShapeDtypeStruct((rows, h_eff), jnp.float32),
        grid_spec=pltpu.PrefetchScalarGridSpec(
            num_scalar_prefetch=0,
            grid=grid,
            in_specs=[
                pl.BlockSpec((batch_tile, d_eff), lambda i: (i, 0)),  # x (streamed)
                _resident_spec((d_eff, h_eff)),                       # w1 (resident)
                _resident_spec((1, h_eff)),                           # b1
                _resident_spec((h_eff, h_eff)),                       # w2 (resident)
                _resident_spec((1, h_eff)),                           # b2
            ],
            out_specs=pl.BlockSpec((batch_tile, h_eff), lambda i: (i, 0)),
        ),
        compiler_params=pltpu.CompilerParams(
            # "parallel" lets v7x shard grid steps across its 2 TCs when the
            # batch is large enough to produce >1 step; on 1-TC v5e/v6e it is a
            # no-op.  TODO(synk): consider pltpu.CORE_PARALLEL / core_map for
            # guaranteed 2-TC sharding on v7x.
            dimension_semantics=("parallel",),
            vmem_limit_bytes=vmem_limit,
        ),
        cost_estimate=cost,
    )(x_k, w1_k, b1_k, w2_k, b2_k)

    return out.reshape(B, H) if pack > 1 else out


def network1_reference(x, w1, b1, w2, b2):
    h = jnp.maximum(x @ w1 + b1, 0.0)
    return jnp.maximum(h @ w2 + b2, 0.0)


def init_params(key, input_dim, hidden_dim):
    """Deterministic init mimicking PyTorch nn.Linear default (uniform +/- 1/sqrt(fan_in))."""
    k1, k2, k3, k4 = jax.random.split(key, 4)
    bound1 = 1.0 / jnp.sqrt(jnp.float32(input_dim))
    bound2 = 1.0 / jnp.sqrt(jnp.float32(hidden_dim))
    # Stored already transposed: (in, out)
    w1 = jax.random.uniform(k1, (input_dim, hidden_dim), jnp.float32, -bound1, bound1)
    b1 = jax.random.uniform(k2, (hidden_dim,), jnp.float32, -bound1, bound1)
    w2 = jax.random.uniform(k3, (hidden_dim, hidden_dim), jnp.float32, -bound2, bound2)
    b2 = jax.random.uniform(k4, (hidden_dim,), jnp.float32, -bound2, bound2)
    return w1, b1, w2, b2


if __name__ == "__main__":
    # Small shapes consistent with the module: bag-of-words features -> hidden.
    input_dim = 64
    hidden_dim = 32

    key = jax.random.PRNGKey(0)
    kx, kp, kx2, kx3 = jax.random.split(key, 4)
    w1, b1, w2, b2 = init_params(kp, input_dim, hidden_dim)

    # Case 1: tiny batch, lane-packed path (B % 4 == 0), single ragged block.
    x_small = jax.random.normal(kx, (8, input_dim), jnp.float32)
    out_small = jax.block_until_ready(network1_forward(x_small, w1, b1, w2, b2))
    ref_small = network1_reference(x_small, w1, b1, w2, b2)
    assert out_small.shape == (8, hidden_dim)
    assert jnp.allclose(out_small, ref_small, atol=1e-5, rtol=1e-5), "mismatch (small batch)"

    # Case 2: larger batch, lane-packed path, ragged last block, no pad/slice.
    x_big = jax.random.normal(kx2, (300, input_dim), jnp.float32)
    out_big = jax.block_until_ready(network1_forward(x_big, w1, b1, w2, b2))
    ref_big = network1_reference(x_big, w1, b1, w2, b2)
    assert out_big.shape == (300, hidden_dim)
    assert jnp.allclose(out_big, ref_big, atol=1e-5, rtol=1e-5), "mismatch (big batch)"

    # Case 3: batch not divisible by the pack factor -> plain (narrow-lane) path.
    x_odd = jax.random.normal(kx3, (10, input_dim), jnp.float32)
    out_odd = jax.block_until_ready(network1_forward(x_odd, w1, b1, w2, b2))
    ref_odd = network1_reference(x_odd, w1, b1, w2, b2)
    assert out_odd.shape == (10, hidden_dim)
    assert jnp.allclose(out_odd, ref_odd, atol=1e-5, rtol=1e-5), "mismatch (odd batch)"

    print("KERNEL_OK")
</pallas_src>

<mosaic_0001>
module attributes {stable_mosaic.version = 11 : i64} {
  func.func @mlp_kernel(%arg0: i32, %arg1: memref<8x256xf32, #tpu.memory_space<vmem>>, %arg2: memref<256x128xf32, #tpu.memory_space<vmem>>, %arg3: memref<1x128xf32, #tpu.memory_space<vmem>>, %arg4: memref<128x128xf32, #tpu.memory_space<vmem>>, %arg5: memref<1x128xf32, #tpu.memory_space<vmem>>, %arg6: memref<8x128xf32, #tpu.memory_space<vmem>>) attributes {dimension_semantics = [#tpu.dimension_semantics<parallel>], iteration_bounds = array<i64: 1>, scalar_prefetch = 0 : i64, scratch_operands = 0 : i64, tpu.core_type = #tpu.core_type<tc>, window_params = [{transform_indices = @transform_0, window_bounds = array<i64: 8, 256>}, {pipeline_mode = #tpu.pipeline_mode<synchronous>, transform_indices = @transform_1, window_bounds = array<i64: 256, 128>}, {pipeline_mode = #tpu.pipeline_mode<synchronous>, transform_indices = @transform_2, window_bounds = array<i64: 1, 128>}, {pipeline_mode = #tpu.pipeline_mode<synchronous>, transform_indices = @transform_3, window_bounds = array<i64: 128, 128>}, {pipeline_mode = #tpu.pipeline_mode<synchronous>, transform_indices = @transform_4, window_bounds = array<i64: 1, 128>}, {transform_indices = @transform_5, window_bounds = array<i64: 8, 128>}]} {
    %c0 = arith.constant 0 : index
    %c0_0 = arith.constant 0 : index
    %0 = vector.load %arg1[%c0, %c0_0] : memref<8x256xf32, #tpu.memory_space<vmem>>, vector<8x256xf32>
    %c0_1 = arith.constant 0 : index
    %c0_2 = arith.constant 0 : index
    %1 = vector.load %arg2[%c0_1, %c0_2] : memref<256x128xf32, #tpu.memory_space<vmem>>, vector<256x128xf32>
    %cst = arith.constant dense<0.000000e+00> : vector<8x128xf32>
    %2 = tpu.matmul %0, %1, %cst {dimension_numbers = #tpu.dot_dimension_numbers<[1], [0], [0], [1], [0, 0, 1, 1], [], []>} : vector<8x256xf32>, vector<256x128xf32>, vector<8x128xf32> -> vector<8x128xf32>
    %c0_3 = arith.constant 0 : index
    %c0_4 = arith.constant 0 : index
    %3 = vector.load %arg3[%c0_3, %c0_4] : memref<1x128xf32, #tpu.memory_space<vmem>>, vector<1x128xf32>
    %4 = vector.broadcast %3 : vector<1x128xf32> to vector<8x128xf32>
    %5 = arith.addf %2, %4 : vector<8x128xf32>
    %cst_5 = arith.constant 0.000000e+00 : f32
    %6 = vector.broadcast %cst_5 : f32 to vector<8x128xf32>
    %7 = arith.maximumf %5, %6 : vector<8x128xf32>
    %c0_6 = arith.constant 0 : index
    %c0_7 = arith.constant 0 : index
    %8 = vector.load %arg4[%c0_6, %c0_7] : memref<128x128xf32, #tpu.memory_space<vmem>>, vector<128x128xf32>
    %cst_8 = arith.constant dense<0.000000e+00> : vector<8x128xf32>
    %9 = tpu.matmul %7, %8, %cst_8 {dimension_numbers = #tpu.dot_dimension_numbers<[1], [0], [0], [1], [0, 0, 1, 1], [], []>} : vector<8x128xf32>, vector<128x128xf32>, vector<8x128xf32> -> vector<8x128xf32>
    %c0_9 = arith.constant 0 : index
    %c0_10 = arith.constant 0 : index
    %10 = vector.load %arg5[%c0_9, %c0_10] : memref<1x128xf32, #tpu.memory_space<vmem>>, vector<1x128xf32>
    %11 = vector.broadcast %10 : vector<1x128xf32> to vector<8x128xf32>
    %12 = arith.addf %9, %11 : vector<8x128xf32>
    %cst_11 = arith.constant 0.000000e+00 : f32
    %13 = vector.broadcast %cst_11 : f32 to vector<8x128xf32>
    %14 = arith.maximumf %12, %13 : vector<8x128xf32>
    %c0_12 = arith.constant 0 : index
    %c0_13 = arith.constant 0 : index
    %15 = vector.load %arg6[%c0_12, %c0_13] : memref<8x128xf32, #tpu.memory_space<vmem>>, vector<8x128xf32>
    tpu.vector_store %arg6[%c0_12, %c0_13], %14 {strides = array<i32>} : memref<8x128xf32, #tpu.memory_space<vmem>>, vector<8x128xf32>,
    return
  }
  func.func @transform_0(%arg0: i32) -> (i32, i32) {
    %c0_i32 = arith.constant 0 : i32
    %c0_i32_0 = arith.constant 0 : i32
    return %arg0, %c0_i32 : i32, i32
  }
  func.func @transform_1(%arg0: i32) -> (i32, i32) {
    %c0_i32 = arith.constant 0 : i32
    %c0_i32_0 = arith.constant 0 : i32
    %c0_i32_1 = arith.constant 0 : i32
    return %c0_i32, %c0_i32_0 : i32, i32
  }
  func.func @transform_2(%arg0: i32) -> (i32, i32) {
    %c0_i32 = arith.constant 0 : i32
    %c0_i32_0 = arith.constant 0 : i32
    %c0_i32_1 = arith.constant 0 : i32
    return %c0_i32, %c0_i32_0 : i32, i32
  }
  func.func @transform_3(%arg0: i32) -> (i32, i32) {
    %c0_i32 = arith.constant 0 : i32
    %c0_i32_0 = arith.constant 0 : i32
    %c0_i32_1 = arith.constant 0 : i32
    return %c0_i32, %c0_i32_0 : i32, i32
  }
  func.func @transform_4(%arg0: i32) -> (i32, i32) {
    %c0_i32 = arith.constant 0 : i32
    %c0_i32_0 = arith.constant 0 : i32
    %c0_i32_1 = arith.constant 0 : i32
    return %c0_i32, %c0_i32_0 : i32, i32
  }
  func.func @transform_5(%arg0: i32) -> (i32, i32) {
    %c0_i32 = arith.constant 0 : i32
    %c0_i32_0 = arith.constant 0 : i32
    return %arg0, %c0_i32 : i32, i32
  }
}

</mosaic_0001>

<bundles_post_ra>
// kernel: tpu_custom_call.1
= control target key start
LH: loop header
LB: loop body
LE: loop exit
PB: predicated region body
PF: predicated region fallthrough
CT: control target
= control target key end

     0   :  { %10 = vsyncpa [#allocation3], 0  ;;  %s398_s0 = inlined_call_operand.hbm [shape: f32[2,256], index: 0, kind: input, shape index: {}]   ;;  %s399_s1 = inlined_call_operand.hbm [shape: f32[256,128], index: 1, kind: input, shape index: {}]   ;;  %s400_s2 = inlined_call_operand.vmem [shape: f32[1,128], index: 2, kind: input, shape index: {}]   ;;  %s401_s3 = inlined_call_operand.hbm [shape: f32[128,128], index: 3, kind: input, shape index: {}]   ;;  %s402_s4 = inlined_call_operand.vmem [shape: f32[1,128], index: 4, kind: input, shape index: {}]   ;;  %s403_s5 = inlined_call_operand.hbm [shape: f32[2,128], index: 5, kind: output, shape index: {}]  }
   0x1   :  { %11 = vsyncpa [#allocation6], 0 }
   0x2   :  { %12 = vsyncpa [#allocation4], 0  ;;  %s30_s20 = sshll.u32 %s399_s1, 4  ;;  %s31_s20 = int_to_ptr.hbm [resolvable:$true] %s30_s20 }
   0x3   :  { %16 = vsyncadd [#allocation3], 192  ;;  %s340_s21 = smov [#allocation5]   ;;  %s17_s25 = sshll.u32 %s398_s0, 4  ;;  %s18_s25 = int_to_ptr.hbm [resolvable:$true] %s17_s25 }
   0x4   :  { %s32_s22 = sshll.u32 %s340_s21, 4  ;;  %s341_s26 = smov 128   ;;  %s33_s22 = int_to_ptr.vmem [resolvable:$true] %s32_s22 }
   0x5   :  { %s342_s27 = smov 8   ;;  %s343_s28 = smov [#allocation2]  }
   0x6   :  { %38 = dma.hbm_to_vmem [thread:$0]  %s31_s20, 4096, %s33_s22, [#allocation6], %s341_s26, %s341_s26, %s342_s27  }
   0x7   :  { %s19_s29 = sshll.u32 %s343_s28, 4  ;;  %s344_s30 = smov 64   ;;  %s20_s29 = int_to_ptr.vmem [resolvable:$true] %s19_s29 }
   0x8   :  { %s345_s6 = smov 4   ;;  %s45_s8 = sshll.u32 %s401_s3, 4  ;;  %s46_s8 = int_to_ptr.hbm [resolvable:$true] %s45_s8 }
   0x9   :  { %25 = dma.hbm_to_vmem [thread:$0]  %s18_s25, 64, %s20_s29, [#allocation3], %s344_s30, %s344_s30, %s345_s6  }
   0xa   :  { %s346_s9 = smov [#allocation7]  }
   0xb   :  { %s47_s10 = sshll.u32 %s346_s9, 4  ;;  %s48_s10 = int_to_ptr.vmem [resolvable:$true] %s47_s10 }
   0xc   :  { %53 = dma.hbm_to_vmem [thread:$0]  %s46_s8, 2048, %s48_s10, [#allocation6], %s341_s26, %s341_s26, %s342_s27  }
   0xd   :  { %334 = dma.done.wait [#allocation3], 256  }
   0xe   :  { %335 = vsyncadd [#allocation3], 4294967040 }
   0xf   :  { %336 = dma.done.wait [#allocation6], 6144  }
  0x10   :  { %337 = vsyncadd [#allocation6], 4294961152  ;;  %v87_v0 = vld [vmem:[#allocation5 + $0x78] sm:$0xff]  ;;  %v86_v1 = vld [vmem:[#allocation5 + $0x70] sm:$0xff] }
  0x11   :  { %v103_v2 = vld [vmem:[#allocation5 + $0xf8] sm:$0xff]  ;;  %123 = vmatpush.msra.mxu0 %v87_v0  ;;  %v102_v3 = vld [vmem:[#allocation5 + $0xf0] sm:$0xff]  ;;  %v85_v4 = vld [vmem:[#allocation5 + $0x68] sm:$0xff] }
  0x12   :  { %143 = vmatpush.msra.mxu1 %v103_v2  ;;  %v101_v5 = vld [vmem:[#allocation5 + $0xe8] sm:$0xff]  ;;  %v84_v6 = vld [vmem:[#allocation5 + $0x60] sm:$0xff]  ;;  %v83_v8 = vld [vmem:[#allocation5 + $0x58] sm:$0xff] }
  0x13   :  { %124 = vmatpush.msra.mxu0 %v86_v1  ;;  %v100_v7 = vld [vmem:[#allocation5 + $0xe0] sm:$0xff]  ;;  %v99_v9 = vld [vmem:[#allocation5 + $0xd8] sm:$0xff]  ;;  %v82_v10 = vld [vmem:[#allocation5 + $0x50] sm:$0xff] }
  0x14   :  { %144 = vmatpush.msra.mxu1 %v102_v3  ;;  %v98_v11 = vld [vmem:[#allocation5 + $0xd0] sm:$0xff]  ;;  %v81_v12 = vld [vmem:[#allocation5 + $0x48] sm:$0xff]  ;;  %v70_v16 = vld [vmem:[#allocation2 + $0x8] sm:$0xf] }
  0x15   :  { %125 = vmatpush.msra.mxu0 %v85_v4  ;;  %v97_v13 = vld [vmem:[#allocation5 + $0xc8] sm:$0xff]  ;;  %v68_v14 = vld [vmem:[#allocation2] sm:$0xf]  ;;  %v69_v15 = vld [vmem:[#allocation2 + $0x4] sm:$0xf] }
  0x16   :  { %145 = vmatpush.msra.mxu1 %v101_v5  ;;  %v71_v17 = vld [vmem:[#allocation2 + $0xc] sm:$0xf]  ;;  %112 = vst [vmem:[#allocation1] ss:$4 sm:$0xff] %v68_v14  ;;  %v80_v18 = vld [vmem:[#allocation5 + $0x40] sm:$0xff]  ;;  %v178_v21 = vld [vmem:[#allocation7 + $0x70] sm:$0xff] }
  0x17   :  { %126 = vmatpush.msra.mxu0 %v84_v6  ;;  %v96_v19 = vld [vmem:[#allocation5 + $0xc0] sm:$0xff]  ;;  %114 = vst [vmem:[#allocation1 + $0x1] ss:$4 sm:$0xff] %v69_v15  ;;  %v179_v20 = vld [vmem:[#allocation7 + $0x78] sm:$0xff]  ;;  %v177_v24 = vld [vmem:[#allocation7 + $0x68] sm:$0xff] }
  0x18   :  { %146 = vmatpush.msra.mxu1 %v100_v7  ;;  %116 = vst [vmem:[#allocation1 + $0x2] ss:$4 sm:$0xff] %v70_v16  ;;  %v79_v22 = vld [vmem:[#allocation5 + $0x38] sm:$0xff]  ;;  %184 = vmatpush.msra.mxu2 %v179_v20  ;;  %v78_v25 = vld [vmem:[#allocation5 + $0x30] sm:$0xff]  ;;  %v176_v27 = vld [vmem:[#allocation7 + $0x60] sm:$0xff] }
  0x19   :  { %127 = vmatpush.msra.mxu0 %v83_v8  ;;  %v95_v23 = vld [vmem:[#allocation5 + $0xb8] sm:$0xff]  ;;  %118 = vst [vmem:[#allocation1 + $0x3] ss:$4 sm:$0xff] %v71_v17  ;;  %v94_v26 = vld [vmem:[#allocation5 + $0xb0] sm:$0xff]  ;;  %v77_v28 = vld [vmem:[#allocation5 + $0x28] sm:$0xff] }
  0x1a   :  { %147 = vmatpush.msra.mxu1 %v99_v9  ;;  %185 = vmatpush.msra.mxu2 %v178_v21  ;;  %v93_v29 = vld [vmem:[#allocation5 + $0xa8] sm:$0xff]  ;;  %v175_v30 = vld [vmem:[#allocation7 + $0x58] sm:$0xff]  ;;  %v76_v31 = vld [vmem:[#allocation5 + $0x20] sm:$0xff] }
  0x1b   :  { %128 = vmatpush.msra.mxu0 %v82_v10  ;;  %v92_v32 = vld [vmem:[#allocation5 + $0xa0] sm:$0xff]  ;;  %v174_v33 = vld [vmem:[#allocation7 + $0x50] sm:$0xff]  ;;  %v75_v34 = vld [vmem:[#allocation5 + $0x18] sm:$0xff] }
  0x1c   :  { %148 = vmatpush.msra.mxu1 %v98_v11  ;;  %186 = vmatpush.msra.mxu2 %v177_v24  ;;  %v91_v35 = vld [vmem:[#allocation5 + $0x98] sm:$0xff]  ;;  %v173_v36 = vld [vmem:[#allocation7 + $0x48] sm:$0xff]  ;;  %v74_v37 = vld [vmem:[#allocation5 + $0x10] sm:$0xff] }
  0x1d   :  { %129 = vmatpush.msra.mxu0 %v81_v12  ;;  %v90_v38 = vld [vmem:[#allocation5 + $0x90] sm:$0xff]  ;;  %v172_v39 = vld [vmem:[#allocation7 + $0x40] sm:$0xff]  ;;  %v73_v40 = vld [vmem:[#allocation5 + $0x8] sm:$0xff] }
  0x1e   :  { %149 = vmatpush.msra.mxu1 %v97_v13  ;;  %187 = vmatpush.msra.mxu2 %v176_v27  ;;  %v89_v41 = vld [vmem:[#allocation5 + $0x88] sm:$0xff]  ;;  %v171_v42 = vld [vmem:[#allocation7 + $0x38] sm:$0xff]  ;;  %v72_v43 = vld [vmem:[#allocation5] sm:$0xff] }
  0x1f   :  { %130 = vmatpush.msra.mxu0 %v80_v18  ;;  %v88_v44 = vld [vmem:[#allocation5 + $0x80] sm:$0xff]  ;;  %v170_v47 = vld [vmem:[#allocation7 + $0x30] sm:$0xff]  ;;  %v169_v48 = vld [vmem:[#allocation7 + $0x28] sm:$0xff] }
  0x20   :  { %150 = vmatpush.msra.mxu1 %v96_v19  ;;  %188 = vmatpush.msra.mxu2 %v175_v30  ;;  %v119_v45 = vld.sshfl [vmem:[#allocation1] sm:$0xff pattern:$0x73625140]  ;;  %v120_v46 = vld.sshfl [vmem:[#allocation1 + $0x8] sm:$0xff pattern:$0x73625140] }
  0x21   :  { %131 = vmatpush.msra.mxu0 %v79_v22  ;;  %v168_v49 = vld [vmem:[#allocation7 + $0x20] sm:$0xff]  ;;  %v167_v50 = vld [vmem:[#allocation7 + $0x18] sm:$0xff]  ;;  %v166_v51 = vld [vmem:[#allocation7 + $0x10] sm:$0xff] }
  0x22   :  { %151 = vmatpush.msra.mxu1 %v95_v23  ;;  %189 = vmatpush.msra.mxu2 %v174_v33  ;;  %v165_v52 = vld [vmem:[#allocation7 + $0x8] sm:$0xff]  ;;  %v164_v53 = vld [vmem:[#allocation7] sm:$0xff] }
  0x23   :  { %132 = vmatpush.msra.mxu0 %v78_v25  ;;  %v236_v54 = vld [vmem:[%s400_s2] ss:$0 sm:$0xff] }
  0x24   :  { %152 = vmatpush.msra.mxu1 %v94_v26  ;;  %190 = vmatpush.msra.mxu2 %v173_v36  ;;  %v237_v60 = vld [vmem:[%s402_s4] ss:$0 sm:$0xff] }
  0x25   :  { %133 = vmatpush.msra.mxu0 %v77_v28 }
  0x26   :  { %153 = vmatpush.msra.mxu1 %v93_v29  ;;  %191 = vmatpush.msra.mxu2 %v172_v39 }
  0x27   :  { %134 = vmatpush.msra.mxu0 %v76_v31 }
  0x28   :  { %154 = vmatpush.msra.mxu1 %v92_v32  ;;  %192 = vmatpush.msra.mxu2 %v171_v42 }
  0x29   :  { %135 = vmatpush.msra.mxu0 %v75_v34 }
  0x2a   :  { %155 = vmatpush.msra.mxu1 %v91_v35  ;;  %193 = vmatpush.msra.mxu2 %v170_v47 }
  0x2b   :  { %136 = vmatpush.msra.mxu0 %v74_v37 }
  0x2c   :  { %156 = vmatpush.msra.mxu1 %v90_v38  ;;  %194 = vmatpush.msra.mxu2 %v169_v48 }
  0x2d   :  { %137 = vmatpush.msra.mxu0 %v73_v40 }
  0x2e   :  { %157 = vmatpush.msra.mxu1 %v89_v41  ;;  %195 = vmatpush.msra.mxu2 %v168_v49 }
  0x2f   :  { %138 = vmatpush.msra.mxu0 %v72_v43 }
  0x30   :  { %158 = vmatpush.msra.mxu1 %v88_v44  ;;  %139 = vmatmul.f32.vlgmr.msra.gmra.mxu0 %v119_v45 }
  0x31   :  { %159 = vmatmul.f32.vlgmr.msra.gmra.mxu1 %v120_v46  ;;  %196 = vmatpush.msra.mxu2 %v167_v50 }
  0x33   :  { %197 = vmatpush.msra.mxu2 %v166_v51 }
  0x35   :  { %198 = vmatpush.msra.mxu2 %v165_v52 }
  0x37   :  { %199 = vmatpush.msra.mxu2 %v164_v53 }
  0xad   :  { %v140_v55 = vpop.f32.mrf.mxu0 }
  0xae   :  { %v160_v56 = vpop.f32.mrf.mxu1  ;;  %v141_v57 = vadd.f32 %v236_v54, %v140_v55 }
  0xb0   :  { %v161_v58 = vadd.f32 %v160_v56, %v141_v57 }
  0xb2   :  { %v163_v59 = vmax.f32 %v161_v58, 0.0 }
  0xb4   :  { %200 = vmatmul.f32.vlgmr.msra.gmra.mxu2 %v163_v59 }
 0x137   :  { %v201_v61 = vpop.f32.mrf.mxu2 }
 0x138   :  { %v202_v62 = vadd.f32 %v237_v60, %v201_v61 }
 0x13a   :  { %v204_v63 = vmax.f32 %v202_v62, 0.0 }
 0x13c   :  { %205 = vst [vmem:[#allocation8] sm:$0xff] %v204_v63 }
 0x13d   :  { %209 = vsyncadd [#allocation4], 96  ;;  %s212_s15 = sshll.u32 %s403_s5, 4  ;;  %s347_s2 = smov [#allocation8]   ;;  %s213_s15 = int_to_ptr.hbm [resolvable:$true] %s212_s15 }
 0x13e   :  { %s210_s16 = sshll.u32 %s347_s2, 4  ;;  %s348_s17 = smov 32   ;;  %s211_s16 = int_to_ptr.vmem [resolvable:$true] %s210_s16 }
 0x13f   :  { %s349_s18 = smov 2  }
 0x140   :  { %218 = dma.vmem_to_hbm [thread:$0]  %s211_s16, 32, %s213_s15, [#allocation4], %s348_s17, %s348_s17, %s349_s18  }
 0x141   :  { %338 = dma.done.wait [#allocation4], 128  }
 0x142   :  { %339 = vsyncadd [#allocation4], 4294967168 }
 0x143   :  { %223 = vsyncpa [#allocation3], 1 }
 0x144   :  { %224 = vsyncpa [#allocation6], 1 }
 0x145   :  { %225 = vsyncpa [#allocation4], 1 }

</bundles_post_ra>
